<compile_context>
chip_gen: v7x
topology: tpu7x:2x2x1
jax: 0.10.0
libtpu: 0.0.40
codegen_flags: <defaults>
</compile_context>

<pallas_src>
import functools

import jax
import jax.numpy as jnp
from jax import lax
from jax.experimental import pallas as pl
from jax.experimental.pallas import tpu as pltpu

_BN_EPS = 1e-5
_BIG_ROW_TILE = 1024          # batch tile for the streaming (large-batch) path
_MAX_FUSED_ROWS_CAP = 8192


@functools.lru_cache(maxsize=1)
def _vmem_capacity_bytes():
    try:
        return int(pltpu.get_tpu_info().vmem_capacity_bytes)
    except Exception:                       # conservative (v7x-sized) fallback
        return 64 * 1024 * 1024


def _pack_factor(batch, c):
    """Lane-packing factor k for small channel counts (C | 128, C < 128)."""
    if c >= 128 or (128 % c) != 0:
        return 1
    k = 128 // c
    return k if (batch % k) == 0 else 1


def _channel_tile(c):
    """Largest lane-dense tile that still yields >=2 channel tiles when possible
    (so the 'parallel' channel axis shards across v7x's two TensorCores)."""
    best = None
    for t in (512, 256, 128):
        if c % t == 0:
            if c // t >= 2:
                return t
            if best is None:
                best = t
    return best if best is not None else c   # full-width block (== array dim)


def _fused_max_rows(tn, itemsize, vmem_cap):
    """Rows of x whose single-pass fused tile fits in ~half of VMEM."""
    # 2x double-buffered input + 2x double-buffered output + f32 temporaries.
    bytes_per_row = tn * (4 * itemsize + 8)
    return max(512, min(int((vmem_cap // 2) // bytes_per_row), _MAX_FUSED_ROWS_CAP))


# --------------------------------------------------------------------------
# Pallas kernels
# --------------------------------------------------------------------------
def _bn_fused_kernel(x_ref, g_ref, b_ref, o_ref, *, inv_count, eps, fold_shifts):
    """Whole batch resident for one channel tile: stats + normalize, single pass."""
    xf = x_ref[...].astype(jnp.float32)
    s = jnp.sum(xf, axis=0, keepdims=True)
    q = jnp.sum(xf * xf, axis=0, keepdims=True)
    # Lane-packed layout: fold the k row-groups that share a channel with
    # circular lane rotations (XLU) so every lane holds its channel's total.
    for sh in fold_shifts:
        s = s + pltpu.roll(s, sh, 1)
        q = q + pltpu.roll(q, sh, 1)
    mean = s * inv_count
    var = jnp.maximum(q * inv_count - mean * mean, 0.0)
    scale = g_ref[...] * lax.rsqrt(var + eps)        # gamma folded into scale
    shift = b_ref[...] - mean * scale
    # Re-read x (already VMEM-resident) for the apply instead of keeping the
    # full-tile f32 copy live across the epilogue.
    o_ref[...] = (x_ref[...].astype(jnp.float32) * scale + shift).astype(o_ref.dtype)


def _bn_stats_kernel(x_ref, sum_ref, sq_ref, *, valid_rows, block_rows):
    """Accumulate per-channel sum / sum-of-squares over the (last) batch axis."""
    @pl.when(pl.program_id(1) == 0)
    def _init():
        sum_ref[...] = jnp.zeros_like(sum_ref)
        sq_ref[...] = jnp.zeros_like(sq_ref)

    xf = x_ref[...].astype(jnp.float32)
    if valid_rows % block_rows != 0:     # ragged last tile: mask rows >= valid_rows
        row = (pl.program_id(1) * block_rows
               + lax.broadcasted_iota(jnp.int32, xf.shape, 0))
        xf = jnp.where(row < valid_rows, xf, 0.0)
    sum_ref[...] += jnp.sum(xf, axis=0, keepdims=True)
    sq_ref[...] += jnp.sum(xf * xf, axis=0, keepdims=True)


def _affine_kernel(x_ref, s_ref, t_ref, o_ref):
    o_ref[...] = (x_ref[...].astype(jnp.float32) * s_ref[...] + t_ref[...]
                  ).astype(o_ref.dtype)


# --------------------------------------------------------------------------
# LinearBatchNorm forward
# --------------------------------------------------------------------------
def linear_batchnorm(x, gamma, beta, running_mean, running_var,
                     eps=_BN_EPS, training=True, max_fused_rows=None):
    """Mirrors LinearBatchNorm.forward: returns a (-1, dim) array."""
    dim = gamma.shape[0]
    x2 = x.reshape(-1, dim)                      # x.view(-1, dim, 1, 1) collapse
    B, C = x2.shape

    # Lane packing for small channel counts: (B, C) -> (B/k, k*C), free reshape.
    k = _pack_factor(B, C)
    rows, ce = B // k, k * C
    xk = x2.reshape(rows, ce) if k > 1 else x2

    tn = _channel_tile(ce)
    nc = ce // tn

    g2 = gamma.astype(jnp.float32).reshape(1, C)
    b2 = beta.astype(jnp.float32).reshape(1, C)

    vmem_cap = _vmem_capacity_bytes()
    vlimit = int(vmem_cap * 3 // 4)

    def _cp(sem):
        return pltpu.CompilerParams(dimension_semantics=sem,
                                    vmem_limit_bytes=vlimit)

    def _tile_params(p):                         # (1, C) f32 -> (1, ce)
        return jnp.tile(p, (1, k)) if k > 1 else p

    def _apply_affine(scale_c, shift_c):
        scale, shift = _tile_params(scale_c), _tile_params(shift_c)
        tb = rows if rows <= _BIG_ROW_TILE else _BIG_ROW_TILE
        nb = pl.cdiv(rows, tb)
        y = pl.pallas_call(
            _affine_kernel,
            out_shape=jax.ShapeDtypeStruct((rows, ce), x2.dtype),
            grid_spec=pltpu.PrefetchScalarGridSpec(
                num_scalar_prefetch=0,
                grid=(nc, nb),
                in_specs=[
                    pl.BlockSpec((tb, tn), lambda c, b: (b, c)),
                    pl.BlockSpec((1, tn), lambda c, b: (0, c)),
                    pl.BlockSpec((1, tn), lambda c, b: (0, c)),
                ],
                out_specs=pl.BlockSpec((tb, tn), lambda c, b: (b, c)),
            ),
            compiler_params=_cp(("parallel", "parallel")),
        )(xk, scale, shift)
        return y.reshape(B, C)

    if not training:
        # Eval mode: running stats fold to one per-channel scale/shift.
        rv = running_var.astype(jnp.float32).reshape(1, C)
        rm = running_mean.astype(jnp.float32).reshape(1, C)
        scale_c = g2 * lax.rsqrt(rv + eps)
        return _apply_affine(scale_c, b2 - rm * scale_c)

    # Training mode (module default): normalize with batch statistics.
    # TODO(synk): the running_mean/running_var momentum update is a training-time
    # buffer side effect of nn.BatchNorm2d and is not produced here (output only).
    inv_count = 1.0 / B
    fused_max = _fused_max_rows(tn, x2.dtype.itemsize, vmem_cap)
    if max_fused_rows is not None:
        fused_max = min(fused_max, int(max_fused_rows))

    if rows <= fused_max:
        # Single-pass fused kernel: whole batch per channel tile in VMEM (1R+1W).
        fold_shifts, sh = [], C
        if k > 1:
            while sh < ce:
                fold_shifts.append(sh)
                sh *= 2
        y = pl.pallas_call(
            functools.partial(_bn_fused_kernel, inv_count=inv_count, eps=eps,
                              fold_shifts=tuple(fold_shifts)),
            out_shape=jax.ShapeDtypeStruct((rows, ce), x2.dtype),
            grid_spec=pltpu.PrefetchScalarGridSpec(
                num_scalar_prefetch=0,
                grid=(nc,),
                in_specs=[
                    pl.BlockSpec((rows, tn), lambda c: (0, c)),
                    pl.BlockSpec((1, tn), lambda c: (0, c)),
                    pl.BlockSpec((1, tn), lambda c: (0, c)),
                ],
                out_specs=pl.BlockSpec((rows, tn), lambda c: (0, c)),
            ),
            compiler_params=_cp(("parallel",)),
        )(xk, _tile_params(g2), _tile_params(b2))
        return y.reshape(B, C)

    # Large batch: streaming stats (accumulator-resident output, batch axis last,
    # ragged last tile masked in-kernel) + plain elementwise affine apply.
    tb = rows if rows <= _BIG_ROW_TILE else _BIG_ROW_TILE
    nb = pl.cdiv(rows, tb)
    sums, sqs = pl.pallas_call(
        functools.partial(_bn_stats_kernel, valid_rows=rows, block_rows=tb),
        out_shape=(jax.ShapeDtypeStruct((1, ce), jnp.float32),
                   jax.ShapeDtypeStruct((1, ce), jnp.float32)),
        grid_spec=pltpu.PrefetchScalarGridSpec(
            num_scalar_prefetch=0,
            grid=(nc, nb),
            in_specs=[pl.BlockSpec((tb, tn), lambda c, b: (b, c))],
            out_specs=(pl.BlockSpec((1, tn), lambda c, b: (0, c)),
                       pl.BlockSpec((1, tn), lambda c, b: (0, c))),
        ),
        compiler_params=_cp(("parallel", "arbitrary")),
    )(xk)

    # Fold packed groups and derive per-channel scale/shift once in plain JAX.
    s_c = sums.reshape(k, C).sum(axis=0, keepdims=True)
    q_c = sqs.reshape(k, C).sum(axis=0, keepdims=True)
    mean = s_c * inv_count
    # NOTE: E[x^2]-E[x]^2 in f32, clamped at 0 (guards against cancellation).
    var = jnp.maximum(q_c * inv_count - mean * mean, 0.0)
    scale_c = g2 * lax.rsqrt(var + eps)
    return _apply_affine(scale_c, b2 - mean * scale_c)


# --------------------------------------------------------------------------
# Self-test
# --------------------------------------------------------------------------
if __name__ == "__main__":
    key = jax.random.PRNGKey(0)

    def ref_train(x2, g, b, eps=_BN_EPS):
        m = x2.mean(0)
        v = ((x2 - m) ** 2).mean(0)
        return (x2 - m) / jnp.sqrt(v + eps) * g + b

    # 1) training mode, small dim=32 -> fused, lane-packed (k=4) path
    dim = 32
    x = jax.random.normal(key, (2, 8, dim), jnp.float32)      # any (..., dim)
    gamma = jnp.ones((dim,), jnp.float32)
    beta = jnp.zeros((dim,), jnp.float32)
    rm0 = jnp.zeros((dim,), jnp.float32)
    rv0 = jnp.ones((dim,), jnp.float32)
    fwd_train = jax.jit(functools.partial(linear_batchnorm, training=True))
    y = fwd_train(x, gamma, beta, rm0, rv0)
    jax.block_until_ready(y)
    x2 = x.reshape(-1, dim)
    assert y.shape == (16, dim), y.shape
    assert bool(jnp.all(jnp.isfinite(y)))
    assert bool(jnp.allclose(y, ref_train(x2, gamma, beta), atol=1e-4, rtol=1e-4))

    # 2) training, streaming path with ragged last batch tile (forced via override)
    dim2 = 128
    xb = jax.random.normal(jax.random.fold_in(key, 1), (1500, dim2), jnp.float32)
    g2 = 1.0 + 0.1 * jax.random.normal(jax.random.fold_in(key, 2), (dim2,), jnp.float32)
    b2 = 0.1 * jax.random.normal(jax.random.fold_in(key, 3), (dim2,), jnp.float32)
    fwd_stream = jax.jit(functools.partial(linear_batchnorm, training=True,
                                           max_fused_rows=512))
    yb = fwd_stream(xb, g2, b2, jnp.zeros((dim2,)), jnp.ones((dim2,)))
    jax.block_until_ready(yb)
    assert bool(jnp.allclose(yb, ref_train(xb, g2, b2), atol=1e-3, rtol=1e-3))

    # 3) training, unpacked full-width channels, batch not a multiple of 8
    dim3 = 48
    xc = jax.random.normal(jax.random.fold_in(key, 6), (10, dim3), jnp.float32)
    g3 = 1.0 + 0.1 * jax.random.normal(jax.random.fold_in(key, 7), (dim3,), jnp.float32)
    b3 = 0.1 * jax.random.normal(jax.random.fold_in(key, 8), (dim3,), jnp.float32)
    yc = fwd_train(xc, g3, b3, jnp.zeros((dim3,)), jnp.ones((dim3,)))
    jax.block_until_ready(yc)
    assert bool(jnp.allclose(yc, ref_train(xc, g3, b3), atol=1e-4, rtol=1e-4))

    # 4) eval mode: running-stat scale/shift (affine) path
    rm = 0.1 * jax.random.normal(jax.random.fold_in(key, 4), (dim,), jnp.float32)
    rv = 0.5 + jnp.abs(jax.random.normal(jax.random.fold_in(key, 5), (dim,), jnp.float32))
    fwd_eval = jax.jit(functools.partial(linear_batchnorm, training=False))
    ye = fwd_eval(x, gamma, beta, rm, rv)
    jax.block_until_ready(ye)
    refe = (x2 - rm) / jnp.sqrt(rv + _BN_EPS) * gamma + beta
    assert bool(jnp.allclose(ye, refe, atol=1e-4, rtol=1e-4))

    print("KERNEL_OK")
</pallas_src>

<mosaic_0001>
module attributes {stable_mosaic.version = 11 : i64} {
  func.func @_bn_fused_kernel(%arg0: i32, %arg1: memref<4x128xf32, #tpu.memory_space<vmem>>, %arg2: memref<1x128xf32, #tpu.memory_space<vmem>>, %arg3: memref<1x128xf32, #tpu.memory_space<vmem>>, %arg4: memref<4x128xf32, #tpu.memory_space<vmem>>) attributes {dimension_semantics = [#tpu.dimension_semantics<parallel>], iteration_bounds = array<i64: 1>, scalar_prefetch = 0 : i64, scratch_operands = 0 : i64, tpu.core_type = #tpu.core_type<tc>, window_params = [{transform_indices = @transform_0, window_bounds = array<i64: 4, 128>}, {transform_indices = @transform_1, window_bounds = array<i64: 1, 128>}, {transform_indices = @transform_2, window_bounds = array<i64: 1, 128>}, {transform_indices = @transform_3, window_bounds = array<i64: 4, 128>}]} {
    %c0 = arith.constant 0 : index
    %c0_0 = arith.constant 0 : index
    %0 = vector.load %arg1[%c0, %c0_0] : memref<4x128xf32, #tpu.memory_space<vmem>>, vector<4x128xf32>
    %cst = arith.constant dense<0.000000e+00> : vector<128xf32>
    %1 = vector.multi_reduction <add>, %0, %cst [0] : vector<4x128xf32> to vector<128xf32>
    %2 = vector.shape_cast %1 : vector<128xf32> to vector<1x128xf32>
    %3 = arith.mulf %0, %0 : vector<4x128xf32>
    %cst_1 = arith.constant dense<0.000000e+00> : vector<128xf32>
    %4 = vector.multi_reduction <add>, %3, %cst_1 [0] : vector<4x128xf32> to vector<128xf32>
    %5 = vector.shape_cast %4 : vector<128xf32> to vector<1x128xf32>
    %c32_i32 = arith.constant 32 : i32
    %6 = tpu.dynamic_rotate %2 by %c32_i32 dim 1 : vector<1x128xf32>, i32 -> vector<1x128xf32>
    %7 = arith.addf %2, %6 : vector<1x128xf32>
    %c32_i32_2 = arith.constant 32 : i32
    %8 = tpu.dynamic_rotate %5 by %c32_i32_2 dim 1 : vector<1x128xf32>, i32 -> vector<1x128xf32>
    %9 = arith.addf %5, %8 : vector<1x128xf32>
    %c64_i32 = arith.constant 64 : i32
    %10 = tpu.dynamic_rotate %7 by %c64_i32 dim 1 : vector<1x128xf32>, i32 -> vector<1x128xf32>
    %11 = arith.addf %7, %10 : vector<1x128xf32>
    %c64_i32_3 = arith.constant 64 : i32
    %12 = tpu.dynamic_rotate %9 by %c64_i32_3 dim 1 : vector<1x128xf32>, i32 -> vector<1x128xf32>
    %13 = arith.addf %9, %12 : vector<1x128xf32>
    %cst_4 = arith.constant 6.250000e-02 : f32
    %14 = vector.broadcast %cst_4 : f32 to vector<1x128xf32>
    %15 = arith.mulf %11, %14 : vector<1x128xf32>
    %cst_5 = arith.constant 6.250000e-02 : f32
    %16 = vector.broadcast %cst_5 : f32 to vector<1x128xf32>
    %17 = arith.mulf %13, %16 : vector<1x128xf32>
    %18 = arith.mulf %15, %15 : vector<1x128xf32>
    %19 = arith.subf %17, %18 : vector<1x128xf32>
    %cst_6 = arith.constant 0.000000e+00 : f32
    %20 = vector.broadcast %cst_6 : f32 to vector<1x128xf32>
    %21 = arith.maximumf %19, %20 : vector<1x128xf32>
    %c0_7 = arith.constant 0 : index
    %c0_8 = arith.constant 0 : index
    %22 = vector.load %arg2[%c0_7, %c0_8] : memref<1x128xf32, #tpu.memory_space<vmem>>, vector<1x128xf32>
    %cst_9 = arith.constant 9.99999974E-6 : f32
    %23 = vector.broadcast %cst_9 : f32 to vector<1x128xf32>
    %24 = arith.addf %21, %23 : vector<1x128xf32>
    %25 = math.rsqrt %24 : vector<1x128xf32>
    %26 = arith.mulf %22, %25 : vector<1x128xf32>
    %c0_10 = arith.constant 0 : index
    %c0_11 = arith.constant 0 : index
    %27 = vector.load %arg3[%c0_10, %c0_11] : memref<1x128xf32, #tpu.memory_space<vmem>>, vector<1x128xf32>
    %28 = arith.mulf %15, %26 : vector<1x128xf32>
    %29 = arith.subf %27, %28 : vector<1x128xf32>
    %c0_12 = arith.constant 0 : index
    %c0_13 = arith.constant 0 : index
    %30 = vector.load %arg1[%c0_12, %c0_13] : memref<4x128xf32, #tpu.memory_space<vmem>>, vector<4x128xf32>
    %31 = vector.broadcast %26 : vector<1x128xf32> to vector<4x128xf32>
    %32 = arith.mulf %30, %31 : vector<4x128xf32>
    %33 = vector.broadcast %29 : vector<1x128xf32> to vector<4x128xf32>
    %34 = arith.addf %32, %33 : vector<4x128xf32>
    %c0_14 = arith.constant 0 : index
    %c0_15 = arith.constant 0 : index
    %35 = vector.load %arg4[%c0_14, %c0_15] : memref<4x128xf32, #tpu.memory_space<vmem>>, vector<4x128xf32>
    tpu.vector_store %arg4[%c0_14, %c0_15], %34 {strides = array<i32>} : memref<4x128xf32, #tpu.memory_space<vmem>>, vector<4x128xf32>,
    return
  }
  func.func @transform_0(%arg0: i32) -> (i32, i32) {
    %c0_i32 = arith.constant 0 : i32
    %c0_i32_0 = arith.constant 0 : i32
    return %c0_i32, %arg0 : i32, i32
  }
  func.func @transform_1(%arg0: i32) -> (i32, i32) {
    %c0_i32 = arith.constant 0 : i32
    %c0_i32_0 = arith.constant 0 : i32
    return %c0_i32, %arg0 : i32, i32
  }
  func.func @transform_2(%arg0: i32) -> (i32, i32) {
    %c0_i32 = arith.constant 0 : i32
    %c0_i32_0 = arith.constant 0 : i32
    return %c0_i32, %arg0 : i32, i32
  }
  func.func @transform_3(%arg0: i32) -> (i32, i32) {
    %c0_i32 = arith.constant 0 : i32
    %c0_i32_0 = arith.constant 0 : i32
    return %c0_i32, %arg0 : i32, i32
  }
}

</mosaic_0001>

<bundles_post_ra>
// kernel: linear_batchnorm.1
= control target key start
LH: loop header
LB: loop body
LE: loop exit
PB: predicated region body
PF: predicated region fallthrough
CT: control target
= control target key end

     0   :  { %vm15_vm0 = vcmask 1043456   ;;  %s78_s14 = smov 32   ;;  %v56_v30 = vlaneseq  ;;  %s112_s0 = inlined_call_operand.vmem [shape: f32[4,128], index: 0, kind: input, shape index: {}]   ;;  %s113_s1 = inlined_call_operand.vmem [shape: f32[1,128], index: 1, kind: input, shape index: {}]   ;;  %s114_s2 = inlined_call_operand.vmem [shape: f32[1,128], index: 2, kind: input, shape index: {}]   ;;  %s115_s3 = inlined_call_operand.vmem [shape: f32[4,128], index: 3, kind: output, shape index: {}]  }
   0x1   :  { %v14_v0 = vld [vmem:[%s112_s0] sm:$0xf]  ;;  %s79_s0 = smov 64  }
   0x2   :  { %v16_v1 = vsel %vm15_vm0, %v14_v0, 0.0  ;;  %v23_v2 = vmul.f32 %v14_v0, %v14_v0  ;;  %v57_v31 = vshrl.u32 %v56_v30, 7  ;;  %v48_v32 = vld [vmem:[%s113_s1] sm:$0x1] }
   0x3   :  { %v17_v3 = vrot.slane %v16_v1, 4  ;;  %v52_v36 = vld [vmem:[%s114_s2] sm:$0x1] }
   0x4   :  { %v24_v4 = vsel %vm15_vm0, %v23_v2, 0.0  ;;  %v58_v33 = vsub.s32 0, %v57_v31 }
   0x5   :  { %v18_v5 = vadd.f32 %v17_v3, %v16_v1  ;;  %v25_v6 = vrot.slane %v24_v4, 4 }
   0x7   :  { %v19_v7 = vrot.slane %v18_v5, 2  ;;  %v26_v8 = vadd.f32 %v25_v6, %v24_v4 }
   0x9   :  { %v20_v9 = vadd.f32 %v19_v7, %v18_v5  ;;  %v27_v10 = vrot.slane %v26_v8, 2 }
   0xb   :  { %v21_v11 = vrot.slane %v20_v9, 1  ;;  %v28_v12 = vadd.f32 %v27_v10, %v26_v8 }
   0xd   :  { %v22_v13 = vadd.f32 %v21_v11, %v20_v9  ;;  %v29_v14 = vrot.slane %v28_v12, 1 }
   0xf   :  { %31 = vrot.lane.b32.xlu0 %v22_v13, %s78_s14  ;;  %v30_v15 = vadd.f32 %v29_v14, %v28_v12 }
  0x13   :  { %34 = vrot.lane.b32.xlu0 %v30_v15, %s78_s14 }
  0x81   :  { %v32_v16 = vpop.permute.xlu0 %31 }
  0x82   :  { %v33_v17 = vadd.f32 %v32_v16, %v22_v13 }
  0x84   :  { %37 = vrot.lane.b32.xlu1 %v33_v17, %s79_s0 }
  0x85   :  { %v35_v18 = vpop.permute.xlu0 %34 }
  0x86   :  { %v36_v19 = vadd.f32 %v35_v18, %v30_v15 }
  0x88   :  { %40 = vrot.lane.b32.xlu1 %v36_v19, %s79_s0 }
  0xf6   :  { %v38_v20 = vpop.permute.xlu1 %37 }
  0xf7   :  { %v39_v21 = vadd.f32 %v38_v20, %v33_v17 }
  0xf9   :  { %v43_v22 = vmul.f32 0.0625, %v39_v21 }
  0xfa   :  { %v41_v23 = vpop.permute.xlu1 %40 }
  0xfb   :  { %v42_v24 = vadd.f32 %v41_v23, %v36_v19  ;;  %v45_v25 = vmul.f32 %v43_v22, %v43_v22 }
  0xfd   :  { %v44_v26 = vmul.f32 0.0625, %v42_v24 }
  0xff   :  { %v46_v27 = vsub.f32 %v44_v26, %v45_v25 }
 0x101   :  { %v47_v28 = vmax.f32 %v46_v27, 0.0 }
 0x103   :  { %v49_v29 = vadd.f32 1e-05, %v47_v28 }
 0x105   :  { %76 = vrsqrt.f32 %v49_v29 }
 0x10f   :  { %v77_v34 = vpop.eup %76 }
 0x110   :  { %v51_v35 = vmul.f32 %v77_v34, %v48_v32 }
 0x112   :  { %v53_v37 = vmul.f32 %v51_v35, %v43_v22  ;;  %v59_v38 = vrot.slane %v51_v35, %v58_v33 }
 0x114   :  { %v54_v39 = vsub.f32 %v52_v36, %v53_v37  ;;  %v61_v40 = vmul.f32 %v59_v38, %v14_v0 }
 0x116   :  { %v66_v41 = vrot.slane %v54_v39, %v58_v33 }
 0x118   :  { %v68_v42 = vadd.f32 %v66_v41, %v61_v40 }
 0x11a   :  { %69 = vst [vmem:[%s115_s3] sm:$0xf] %v68_v42 }

</bundles_post_ra>
